<compile_context>
chip_gen: v7x
topology: tpu7x:2x2x1
jax: 0.10.0
libtpu: 0.0.40
codegen_flags: <defaults>
</compile_context>

<pallas_src>
import jax
import jax.numpy as jnp
from jax.experimental import pallas as pl
from jax.experimental.pallas import tpu as pltpu


def edges_kernel(alpha_ref, rows_ref, cols_ref, out_ref):
    """Computes one (tm, n) row-tile of the adjacency matrix.

    alpha_ref : SMEM (1,)    f32  -- scalar parameter
    rows_ref  : VMEM (2, n)  f32  -- row 0 = eta, row 1 = phi (lane-dense slab)
    cols_ref  : VMEM (tm, 2) f32  -- this tile's eta/phi as columns
    out_ref   : VMEM (tm, n) f32  -- output row tile (also used as staging)
    """
    tm, n = out_ref.shape
    alpha = alpha_ref[0]
    neg_alpha = -alpha

    eta_row = rows_ref[0:1, :]          # (1, n)
    phi_row = rows_ref[1:2, :]          # (1, n)
    eta_col = cols_ref[:, 0:1]          # (tm, 1)
    phi_col = cols_ref[:, 1:2]          # (tm, 1)

    pi = jnp.float32(jnp.pi)
    two_pi = jnp.float32(2.0 * jnp.pi)

    # deta = eta_i - eta_j  (broadcast (tm,1) - (1,n) -> (tm,n))
    deta = eta_col - eta_row

    # dphi = delta_phi with 2*pi wrap
    dphi = jnp.abs(phi_col - phi_row)
    dphi = jnp.where(dphi > pi, two_pi - dphi, dphi)

    # t = log A = -alpha * dR^2
    t = neg_alpha * (deta * deta + dphi * dphi)          # (tm, n)

    # Exact max-subtracted softmax over A = exp(t) for ANY sign of alpha:
    # rowmax(exp(t)) == exp(rowmax(t)) because exp is monotone, so the shift is
    # a cheap (tm,1) exp and one XLU row-reduce (off the VALU critical path).
    shift = jnp.exp(jnp.max(t, axis=1, keepdims=True))   # (tm, 1) == rowmax(A)
    a = jnp.exp(t)                                       # (tm, n) == A

    # Stage the unnormalized softmax exponentials directly in out_ref so no
    # separate (tm, n) temporary has to live across the row-sum barrier.
    out_ref[...] = jnp.exp(a - shift)
    s = jnp.sum(out_ref[...], axis=1, keepdims=True)     # (tm, 1)
    inv = pl.reciprocal(s, approx=False)                 # exact; (tm,1) only

    # "+ identity", fused with the normalization into one final store.
    # One (tm,1) row-index column and a single (tm,n) lane iota; no full-tile
    # add-then-where and no second full-tile int32 intermediate.
    row_start = pl.program_id(0) * tm
    row_ids = row_start + jax.lax.broadcasted_iota(jnp.int32, (tm, 1), 0)
    col_ids = jax.lax.broadcasted_iota(jnp.int32, (tm, n), 1)
    eye_tile = jnp.where(col_ids == row_ids, jnp.float32(1.0), jnp.float32(0.0))
    out_ref[...] = out_ref[...] * inv + eye_tile


def _vmem_config():
    """Generation-aware scoped-VMEM limit and tile budget.

    ~70% of physical VMEM, capped at 96 MiB:
      v5e/v6e (128 MiB physical) -> ~90 MiB scoped limit,
      v7x     ( 64 MiB physical) -> ~45 MiB scoped limit.
    Falls back to the smallest (v7x) size if the query is unavailable.
    """
    try:
        cap = int(pltpu.get_tpu_info().vmem_capacity_bytes)
    except Exception:
        cap = 64 * 1024 * 1024
    vmem_limit = max(32 * 1024 * 1024, min(96 * 1024 * 1024, int(cap * 0.7)))
    # Leave a few MiB of the scoped limit for Mosaic internals / small inputs.
    tile_budget = vmem_limit - 4 * 1024 * 1024
    return vmem_limit, tile_budget


def _pick_row_tile(n, max_tile, vmem_budget_bytes):
    """Row-tile size: whole matrix for small n; otherwise a multiple of 8 whose
    WHOLE per-step footprint fits the budget: double-buffered (tm,n) f32 output
    tile plus ~2 tile-sized fused/staging temporaries  =>  ~4 * tm * n * 4 B."""
    if n <= max_tile:
        return n                      # single block; full-dim exemption applies
    tm = max_tile                     # power-of-two multiple of 8
    while tm > 8 and 4 * tm * n * 4 > vmem_budget_bytes:
        tm //= 2
    return tm


def edges_forward(x, alpha, *, max_tile=512):
    """Pallas equivalent of Edges.forward.

    x:     (n, F) float32, columns [*, eta, phi, ...]
    alpha: scalar float32 parameter
    returns (n, n) float32 adjacency matrix
    """
    x = x.astype(jnp.float32)
    n = x.shape[0]

    # Glue: one lane-dense (2, n) row slab and its (n, 2) transpose for the
    # per-tile column broadcasts.  alpha goes to SMEM as a (1,) scalar.
    feat_cols = x[:, 1:3]                       # (n, 2): [:,0]=eta, [:,1]=phi
    feat_rows = feat_cols.T                     # (2, n): row0=eta, row1=phi
    alpha_arr = jnp.reshape(jnp.asarray(alpha, dtype=jnp.float32), (1,))

    vmem_limit, tile_budget = _vmem_config()
    tm = _pick_row_tile(n, max_tile, tile_budget)
    grid = (pl.cdiv(n, tm),)

    return pl.pallas_call(
        edges_kernel,
        out_shape=jax.ShapeDtypeStruct((n, n), jnp.float32),
        grid=grid,
        in_specs=[
            pl.BlockSpec(memory_space=pltpu.SMEM),            # alpha (scalar path)
            pl.BlockSpec((2, n), lambda i: (0, 0)),            # eta/phi rows, full
            pl.BlockSpec((tm, 2), lambda i: (i, 0)),           # this tile's columns
        ],
        out_specs=pl.BlockSpec((tm, n), lambda i: (i, 0)),
        compiler_params=pltpu.CompilerParams(
            dimension_semantics=("parallel",),                 # v7x: 2-TC split
            vmem_limit_bytes=vmem_limit,
        ),
    )(alpha_arr, feat_rows, feat_cols)


def edges_reference(x, alpha):
    """Pure-JAX reference mirroring the PyTorch forward, for verification."""
    eta, phi = x[:, 1], x[:, 2]
    deta = eta[:, None] - eta[None, :]
    dphi = jnp.abs(phi[:, None] - phi[None, :])
    dphi = jnp.where(dphi > jnp.pi, 2.0 * jnp.pi - dphi, dphi)
    drdr = deta ** 2 + dphi ** 2
    a = jnp.exp(-alpha * drdr)
    a = jax.nn.softmax(a, axis=1) + jnp.eye(x.shape[0], dtype=x.dtype)
    return a


if __name__ == "__main__":
    key = jax.random.PRNGKey(0)
    k_alpha, k_x, k_x2 = jax.random.split(key, 3)

    # deterministic parameter init: alpha_init * rand(1), alpha_init = 1
    alpha_param = 1.0 * jax.random.uniform(k_alpha, (1,), dtype=jnp.float32)

    # small synthetic input: n=16 vertices, F=4 features (pt, eta, phi, E)
    n, F = 16, 4
    x = jax.random.normal(k_x, (n, F), dtype=jnp.float32)
    # keep phi in a physical-ish range [-pi, pi]
    x = x.at[:, 2].set(jnp.pi * jnp.tanh(x[:, 2]))

    out = edges_forward(x, alpha_param[0])
    out = jax.block_until_ready(out)
    ref = edges_reference(x, alpha_param[0])
    assert out.shape == (n, n)
    assert jnp.allclose(out, ref, atol=1e-5, rtol=1e-5)

    # exercise the multi-tile grid + ragged last tile path (n % tm != 0)
    n2 = 200
    x2 = jax.random.normal(k_x2, (n2, F), dtype=jnp.float32)
    x2 = x2.at[:, 2].set(jnp.pi * jnp.tanh(x2[:, 2]))
    out2 = jax.block_until_ready(edges_forward(x2, alpha_param[0], max_tile=64))
    ref2 = edges_reference(x2, alpha_param[0])
    assert jnp.allclose(out2, ref2, atol=1e-5, rtol=1e-5)

    print("KERNEL_OK")
</pallas_src>

<mosaic_0001>
module attributes {stable_mosaic.version = 11 : i64} {
  func.func @edges_kernel(%arg0: i32, %arg1: memref<1xf32, #tpu.memory_space<smem>>, %arg2: memref<2x16xf32, #tpu.memory_space<vmem>>, %arg3: memref<16x2xf32, #tpu.memory_space<vmem>>, %arg4: memref<16x16xf32, #tpu.memory_space<vmem>>) attributes {dimension_semantics = [#tpu.dimension_semantics<parallel>], iteration_bounds = array<i64: 1>, scalar_prefetch = 0 : i64, scratch_operands = 0 : i64, tpu.core_type = #tpu.core_type<tc>, window_params = [{transform_indices = @transform_0, window_bounds = array<i64: 1>}, {pipeline_mode = #tpu.pipeline_mode<synchronous>, transform_indices = @transform_1, window_bounds = array<i64: 2, 16>}, {transform_indices = @transform_2, window_bounds = array<i64: 16, 2>}, {transform_indices = @transform_3, window_bounds = array<i64: 16, 16>}]} {
    %c0 = arith.constant 0 : index
    %0 = memref.load %arg1[%c0] : memref<1xf32, #tpu.memory_space<smem>>
    %cst = arith.constant 0.000000e+00 : f32
    %1 = arith.subf %cst, %0 : f32
    %c0_0 = arith.constant 0 : index
    %c0_1 = arith.constant 0 : index
    %2 = vector.load %arg2[%c0_0, %c0_1] : memref<2x16xf32, #tpu.memory_space<vmem>>, vector<1x16xf32>
    %c1 = arith.constant 1 : index
    %c0_2 = arith.constant 0 : index
    %3 = vector.load %arg2[%c1, %c0_2] : memref<2x16xf32, #tpu.memory_space<vmem>>, vector<1x16xf32>
    %c0_3 = arith.constant 0 : index
    %c0_4 = arith.constant 0 : index
    %4 = vector.load %arg3[%c0_3, %c0_4] : memref<16x2xf32, #tpu.memory_space<vmem>>, vector<16x1xf32>
    %c0_5 = arith.constant 0 : index
    %c1_6 = arith.constant 1 : index
    %5 = vector.load %arg3[%c0_5, %c1_6] : memref<16x2xf32, #tpu.memory_space<vmem>>, vector<16x1xf32>
    %6 = vector.broadcast %4 : vector<16x1xf32> to vector<16x16xf32>
    %7 = vector.broadcast %2 : vector<1x16xf32> to vector<16x16xf32>
    %8 = arith.subf %6, %7 : vector<16x16xf32>
    %9 = vector.broadcast %5 : vector<16x1xf32> to vector<16x16xf32>
    %10 = vector.broadcast %3 : vector<1x16xf32> to vector<16x16xf32>
    %11 = arith.subf %9, %10 : vector<16x16xf32>
    %12 = math.absf %11 : vector<16x16xf32>
    %cst_7 = arith.constant 3.14159274 : f32
    %13 = vector.broadcast %cst_7 : f32 to vector<16x16xf32>
    %14 = arith.cmpf ogt, %12, %13 : vector<16x16xf32>
    %cst_8 = arith.constant 6.28318548 : f32
    %15 = vector.broadcast %cst_8 : f32 to vector<16x16xf32>
    %16 = arith.subf %15, %12 : vector<16x16xf32>
    %17 = arith.select %14, %16, %12 : vector<16x16xi1>, vector<16x16xf32>
    %18 = arith.mulf %8, %8 : vector<16x16xf32>
    %19 = arith.mulf %17, %17 : vector<16x16xf32>
    %20 = arith.addf %18, %19 : vector<16x16xf32>
    %21 = vector.broadcast %1 : f32 to vector<16x16xf32>
    %22 = arith.mulf %21, %20 : vector<16x16xf32>
    %cst_9 = arith.constant dense<0xFF800000> : vector<16xf32>
    %23 = vector.multi_reduction <maximumf>, %22, %cst_9 [1] : vector<16x16xf32> to vector<16xf32>
    %24 = vector.shape_cast %23 : vector<16xf32> to vector<16x1xf32>
    %25 = math.exp %24 : vector<16x1xf32>
    %26 = math.exp %22 : vector<16x16xf32>
    %27 = vector.broadcast %25 : vector<16x1xf32> to vector<16x16xf32>
    %28 = arith.subf %26, %27 : vector<16x16xf32>
    %29 = math.exp %28 : vector<16x16xf32>
    %c0_10 = arith.constant 0 : index
    %c0_11 = arith.constant 0 : index
    %30 = vector.load %arg4[%c0_10, %c0_11] : memref<16x16xf32, #tpu.memory_space<vmem>>, vector<16x16xf32>
    tpu.vector_store %arg4[%c0_10, %c0_11], %29 {strides = array<i32>} : memref<16x16xf32, #tpu.memory_space<vmem>>, vector<16x16xf32>,
    %c0_12 = arith.constant 0 : index
    %c0_13 = arith.constant 0 : index
    %31 = vector.load %arg4[%c0_12, %c0_13] : memref<16x16xf32, #tpu.memory_space<vmem>>, vector<16x16xf32>
    %cst_14 = arith.constant dense<0.000000e+00> : vector<16xf32>
    %32 = vector.multi_reduction <add>, %31, %cst_14 [1] : vector<16x16xf32> to vector<16xf32>
    %33 = vector.shape_cast %32 : vector<16xf32> to vector<16x1xf32>
    %34 = tpu.reciprocal %33 : vector<16x1xf32> -> vector<16x1xf32>
    %c16_i32 = arith.constant 16 : i32
    %35 = arith.muli %arg0, %c16_i32 : i32
    %36 = tpu.iota {dimensions = array<i32: 0>} : vector<16x1xi32>
    %37 = vector.broadcast %35 : i32 to vector<16x1xi32>
    %38 = arith.addi %37, %36 : vector<16x1xi32>
    %39 = tpu.iota {dimensions = array<i32: 1>} : vector<16x16xi32>
    %40 = vector.broadcast %38 : vector<16x1xi32> to vector<16x16xi32>
    %41 = arith.cmpi eq, %39, %40 : vector<16x16xi32>
    %cst_15 = arith.constant 1.000000e+00 : f32
    %cst_16 = arith.constant 0.000000e+00 : f32
    %42 = vector.broadcast %cst_15 : f32 to vector<16x16xf32>
    %43 = vector.broadcast %cst_16 : f32 to vector<16x16xf32>
    %44 = arith.select %41, %42, %43 : vector<16x16xi1>, vector<16x16xf32>
    %c0_17 = arith.constant 0 : index
    %c0_18 = arith.constant 0 : index
    %45 = vector.load %arg4[%c0_17, %c0_18] : memref<16x16xf32, #tpu.memory_space<vmem>>, vector<16x16xf32>
    %46 = vector.broadcast %34 : vector<16x1xf32> to vector<16x16xf32>
    %47 = arith.mulf %45, %46 : vector<16x16xf32>
    %48 = arith.addf %47, %44 : vector<16x16xf32>
    %c0_19 = arith.constant 0 : index
    %c0_20 = arith.constant 0 : index
    %49 = vector.load %arg4[%c0_19, %c0_20] : memref<16x16xf32, #tpu.memory_space<vmem>>, vector<16x16xf32>
    tpu.vector_store %arg4[%c0_19, %c0_20], %48 {strides = array<i32>} : memref<16x16xf32, #tpu.memory_space<vmem>>, vector<16x16xf32>,
    return
  }
  func.func @transform_0(%arg0: i32) -> i32 {
    %c0_i32 = arith.constant 0 : i32
    %c0_i32_0 = arith.constant 0 : i32
    return %c0_i32 : i32
  }
  func.func @transform_1(%arg0: i32) -> (i32, i32) {
    %c0_i32 = arith.constant 0 : i32
    %c0_i32_0 = arith.constant 0 : i32
    %c0_i32_1 = arith.constant 0 : i32
    return %c0_i32, %c0_i32_0 : i32, i32
  }
  func.func @transform_2(%arg0: i32) -> (i32, i32) {
    %c0_i32 = arith.constant 0 : i32
    %c0_i32_0 = arith.constant 0 : i32
    return %arg0, %c0_i32 : i32, i32
  }
  func.func @transform_3(%arg0: i32) -> (i32, i32) {
    %c0_i32 = arith.constant 0 : i32
    %c0_i32_0 = arith.constant 0 : i32
    return %arg0, %c0_i32 : i32, i32
  }
}

</mosaic_0001>

<bundles_post_ra>
// kernel: tpu_custom_call.1
= control target key start
LH: loop header
LB: loop body
LE: loop exit
PB: predicated region body
PF: predicated region fallthrough
CT: control target
= control target key end

     0   :  { %s248_s0 = inlined_call_operand.<no memory space> [shape: f32[1], index: 0, kind: input, shape index: {}]   ;;  %s249_s1 = inlined_call_operand.vmem [shape: f32[2,16], index: 1, kind: input, shape index: {}]   ;;  %s250_s2 = inlined_call_operand.vmem [shape: f32[16,2], index: 2, kind: input, shape index: {}]   ;;  %s251_s3 = inlined_call_operand.hbm [shape: f32[16,16], index: 3, kind: output, shape index: {}]  }
   0x1   :  { %v20_v0 = vld [vmem:[%s250_s2] sm:$0xff] }
   0x2   :  { %9 = vsyncpa [#allocation4], 0  ;;  %v187_v1 = vmov 1   ;;  %v188_v2 = vmov 0   ;;  %v21_v3 = vld [vmem:[%s250_s2 + $0x8] sm:$0xff]  ;;  %s17_s21 = ssub.f32 0.0, %s248_s0  ;;  %v103_v51 = vlaneseq }
   0x3   :  { %145 = vset.pattern.permute.xlu0 %v187_v1  ;;  %146 = vset.pattern.permute.xlu1 %v188_v2  ;;  %v138_v4 = vld [vmem:[%s249_s1 + $0x1] ss:$0 sm:$0xff]  ;;  %v137_v5 = vld [vmem:[%s249_s1] ss:$0 sm:$0xff]  ;;  %vm69_vm2 = vcmask 130048   ;;  %v189_v58 = vmov 0.0  }
   0x4   :  { %39 = vperm.xlu0 %145, %v20_v0   ;;  %24 = vperm.xlu1 %146, %v20_v0   ;;  %v66_v21 = vstv %s17_s21  ;;  %v104_v53 = vshrl.u32 %v103_v51, 7  ;;  %v110_v54 = vand.u32 127, %v103_v51  ;;  %s190_s0 = smov [#allocation3]  }
   0x5   :  { %s126_s1 = sshll.u32 %s190_s0, 4  ;;  %s127_s1 = int_to_ptr.vmem [resolvable:$true] %s126_s1 }
   0x6   :  { %vm111_vm3 = vcmp.eq.s32.totalorder %v110_v54, %v104_v53  ;;  %v105_v56 = vadd.s32 8, %v104_v53  ;;  %s163_s22 = scalar_lea.vmem %s127_s1, 256  ;;  %p168_p1 = scmp.lt.s32.totalorder %s127_s1, %s127_s1 }
   0x7   :  { %v113_v59 = vsel %vm111_vm3, 1.0, %v189_v58  ;;  %p164_p0 = scmp.ne.s32.totalorder %s127_s1, %s163_s22  ;;  %p169_p2 = scmp.lt.s32.totalorder %s163_s22, %s163_s22 }
   0x8   :  { %43 = vperm.xlu0 %145, %v21_v3   ;;  %29 = vperm.xlu1 %146, %v21_v3   ;;  %vm112_vm4 = vcmp.eq.s32.totalorder %v110_v54, %v105_v56 }
   0x9   :  { %v114_v63 = vsel %vm112_vm4, 1.0, %v189_v58  ;;  %p170_p3 = por %p169_p2, %p168_p1 }
   0xb   :  { %p171_p4 = pnand %p170_p3, %p164_p0 }
  0x83   :  { %v40_v6 = vpop.permute.xlu0 %39  ;;  %v25_v7 = vpop.permute.xlu1 %24 }
  0x84   :  { %v50_v8 = vsub.f32 %v40_v6, %v138_v4  ;;  %v36_v9 = vsub.f32 %v25_v7, %v137_v5 }
  0x86   :  { %v52_v10 = vand.u32 2147483647, %v50_v8  ;;  %v60_v15 = vmul.f32 %v36_v9, %v36_v9 }
  0x87   :  { %v44_v11 = vpop.permute.xlu0 %43  ;;  %v30_v14 = vpop.permute.xlu1 %29 }
  0x88   :  { %vm54_vm0 = vcmp.gt.f32.partialorder %v52_v10, 3.1415927  ;;  %v56_v12 = vsub.f32 6.2831855, %v52_v10  ;;  %v51_v13 = vsub.f32 %v44_v11, %v138_v4  ;;  %v37_v19 = vsub.f32 %v30_v14, %v137_v5 }
  0x8a   :  { %v58_v16 = vsel %vm54_vm0, %v56_v12, %v52_v10  ;;  %v53_v17 = vand.u32 2147483647, %v51_v13  ;;  %v61_v24 = vmul.f32 %v37_v19, %v37_v19 }
  0x8b   :  { %v62_v18 = vmul.f32 %v58_v16, %v58_v16 }
  0x8c   :  { %vm55_vm1 = vcmp.gt.f32.partialorder %v53_v17, 3.1415927  ;;  %v57_v20 = vsub.f32 6.2831855, %v53_v17 }
  0x8d   :  { %v64_v22 = vadd.f32 %v62_v18, %v60_v15 }
  0x8e   :  { %v59_v23 = vsel %vm55_vm1, %v57_v20, %v53_v17 }
  0x8f   :  { %v63_v25 = vmul.f32 %v59_v23, %v59_v23  ;;  %v67_v26 = vmul.f32 %v66_v21, %v64_v22 }
  0x91   :  { %v65_v27 = vadd.f32 %v63_v25, %v61_v24  ;;  %v70_v28 = vsel %vm69_vm2, %v67_v26, -inf  ;;  %v80_v31 = vmul.f32 1.442695, %v67_v26 }
  0x92   :  { %71 = vmax.xlane.f32.xlu0 %v70_v28 }
  0x93   :  { %v68_v29 = vmul.f32 %v66_v21, %v65_v27  ;;  %147 = vpow2.f32 %v80_v31 }
  0x95   :  { %v73_v30 = vsel %vm69_vm2, %v68_v29, -inf  ;;  %v82_v34 = vmul.f32 1.442695, %v68_v29 }
  0x96   :  { %74 = vmax.xlane.f32.xlu1 %v73_v30 }
  0x9d   :  { %v148_v37 = vpop.eup %147 }
 0x11f   :  { %v72_v32 = vpop.xlane.xlu0 %71 }
 0x120   :  { %v76_v33 = vmul.f32 1.442695, %v72_v32 }
 0x122   :  { %149 = vpow2.f32 %v76_v33 }
 0x123   :  { %v75_v35 = vpop.xlane.xlu1 %74  ;;  %151 = vpow2.f32 %v82_v34 }
 0x124   :  { %v78_v36 = vmul.f32 1.442695, %v75_v35 }
 0x126   :  { %153 = vpow2.f32 %v78_v36 }
 0x12c   :  { %v150_v38 = vpop.eup %149 }
 0x12d   :  { %v84_v39 = vsub.f32 %v148_v37, %v150_v38  ;;  %v152_v40 = vpop.eup %151 }
 0x12f   :  { %v86_v41 = vmul.f32 1.442695, %v84_v39 }
 0x130   :  { %v154_v42 = vpop.eup %153 }
 0x131   :  { %155 = vpow2.f32 %v86_v41  ;;  %v85_v43 = vsub.f32 %v152_v40, %v154_v42 }
 0x133   :  { %v88_v44 = vmul.f32 1.442695, %v85_v43 }
 0x135   :  { %157 = vpow2.f32 %v88_v44 }
 0x13b   :  { %v156_v45 = vpop.eup %155 }
 0x13c   :  { %90 = vst.msk [vmem:[#allocation3] sm:$0xff] %vm69_vm2, %v156_v45 }
 0x13f   :  { %v158_v46 = vpop.eup %157 }
 0x140   :  { %91 = vst.msk [vmem:[#allocation3 + $0x8] sm:$0xff] %vm69_vm2, %v158_v46 }
 0x143   :  { %v92_v47 = vld [vmem:[#allocation3] sm:$0xff] }
 0x144   :  { %v94_v48 = vsel %vm69_vm2, %v92_v47, 0.0 }
 0x145   :  { %95 = vadd.xlane.f32.xlu0 %v94_v48 }
 0x147   :  { %v93_v49 = vld [vmem:[#allocation3 + $0x8] sm:$0xff] }
 0x148   :  { %v97_v50 = vsel %vm69_vm2, %v93_v49, 0.0 }
 0x149   :  { %98 = vadd.xlane.f32.xlu0 %v97_v50 }
 0x1d2   :  { %v96_v52 = vpop.xlane.xlu0 %95 }
 0x1d3   :  { %159 = vrcp.f32 %v96_v52 }
 0x1d6   :  { %v99_v55 = vpop.xlane.xlu0 %98 }
 0x1d7   :  { %161 = vrcp.f32 %v99_v55 }
 0x1dd   :  { %v160_v57 = vpop.eup %159 }
 0x1de   :  { %v115_v60 = vmul.f32 %v160_v57, %v92_v47 }
 0x1e0   :  { %v117_v61 = vadd.f32 %v115_v60, %v113_v59 }
 0x1e1   :  { %v162_v62 = vpop.eup %161 }
 0x1e2   :  { %119 = vst.msk [vmem:[#allocation3] sm:$0xff] %vm69_vm2, %v117_v61  ;;  %v116_v0 = vmul.f32 %v162_v62, %v93_v49 }
 0x1e4   :  { %v118_v1 = vadd.f32 %v116_v0, %v114_v63 }
 0x1e6   :  { %120 = vst.msk [vmem:[#allocation3 + $0x8] sm:$0xff] %vm69_vm2, %v118_v1 }
 0x1e7   :  { %174 = shalt.err (!%p171_p4)
}
 0x1e8   :  { %s175_s25 = scalar_lea.hbm %s251_s3, 256 }
 0x1e9   :  { %p176_p5 = scmp.ne.s32.totalorder %s251_s3, %s175_s25  ;;  %p179_p6 = scmp.lt.u32.totalorder %s175_s25, %s251_s3 }
 0x1eb   :  { %p181_p7 = pnand %p179_p6, %p176_p5 }
 0x1ed   :  { %184 = shalt.err (!%p181_p7)
}
 0x1ee   :  { %s191_s30 = smov 128   ;;  %s192_s4 = smov 8  }
 0x1ef   :  { %132 = dma.vmem_to_hbm [thread:$0]  %s127_s1, 256, %s251_s3, [#allocation4], %s191_s30, %s191_s30, %s192_s4  }
 0x1f0   :  { %185 = dma.done.wait [#allocation4], 256  }
 0x1f1   :  { %186 = vsyncadd [#allocation4], 4294967040 }
 0x1f2   :  { %136 = vsyncpa [#allocation4], 1 }

</bundles_post_ra>
